<compile_context>
chip_gen: v7x
topology: tpu7x:2x2x1
jax: 0.10.0
libtpu: 0.0.40
codegen_flags: <defaults>
</compile_context>

<pallas_src>
import jax
import jax.numpy as jnp
from jax import lax
from jax.experimental import pallas as pl
from jax.experimental.pallas import tpu as pltpu


def pooler_kernel(cls_ref, w_ref, b_ref, out_ref):
    # cls_ref: (BT, D_in)   CLS-token rows, native dtype
    # w_ref:   (D_out, D_in) dense weight in PyTorch layout, native dtype
    # b_ref:   (1, D_out)   dense bias, f32
    # out_ref: (BT, D_out)  pooled output
    y = lax.dot_general(
        cls_ref[...], w_ref[...],
        dimension_numbers=(((1,), (1,)), ((), ())),   # contract on D_in of both
        preferred_element_type=jnp.float32,
    )
    y = y + b_ref[...]                                # f32 epilogue
    out_ref[...] = jnp.tanh(y).astype(out_ref.dtype)  # tanh on EUP, cast at store


def _round_up(x, m):
    return ((x + m - 1) // m) * m


def pooler_forward(hidden_states, dense_weight, dense_bias):
    """tanh(F.linear(hidden_states[:, 0], dense_weight, dense_bias)) via Pallas."""
    B, S, D_in = hidden_states.shape
    D_out = dense_weight.shape[0]
    out_dtype = hidden_states.dtype

    # CLS-only: feed a lane-dense (B, D_in) array; the kernel never sees the S axis.
    cls = hidden_states[:, 0, :]                          # (B, D_in), native dtype

    # Bias as a (1, D_out) f32 row for the f32 epilogue.
    b2 = dense_bias.reshape(1, D_out).astype(jnp.float32)

    # Batch tile: large (amortize per-step overhead, fill MXU M), sublane-aligned.
    BT = min(_round_up(B, 8), 256)
    if B > 8 and pl.cdiv(B, BT) < 2:
        # Ensure >= 2 grid steps so the "parallel" axis can split across the two
        # TensorCores on v7x (no-op for tiny batches like the demo).
        BT = max(8, _round_up(pl.cdiv(B, 2), 8))
    n_steps = pl.cdiv(B, BT)
    B_pad = n_steps * BT
    if B_pad != B:
        cls = jnp.pad(cls, ((0, B_pad - B), (0, 0)))      # zero-padded tail, masked off below

    itemsize = jnp.dtype(cls.dtype).itemsize
    cost = pl.CostEstimate(
        flops=2 * B_pad * D_in * D_out,
        transcendentals=B_pad * D_out,
        bytes_accessed=(B_pad * D_in * itemsize
                        + D_out * D_in * jnp.dtype(dense_weight.dtype).itemsize
                        + D_out * 4
                        + B_pad * D_out * jnp.dtype(out_dtype).itemsize),
    )

    out = pl.pallas_call(
        pooler_kernel,
        out_shape=jax.ShapeDtypeStruct((B_pad, D_out), out_dtype),
        grid=(n_steps,),
        in_specs=[
            pl.BlockSpec((BT, D_in), lambda i: (i, 0)),       # CLS rows per step
            pl.BlockSpec((D_out, D_in), lambda i: (0, 0)),    # weight: resident whole-array block
            pl.BlockSpec((1, D_out), lambda i: (0, 0)),       # bias: resident
        ],
        out_specs=pl.BlockSpec((BT, D_out), lambda i: (i, 0)),
        compiler_params=pltpu.CompilerParams(
            dimension_semantics=("parallel",)),
        cost_estimate=cost,
    )(cls, dense_weight, b2)

    return out[:B] if B_pad != B else out


if __name__ == "__main__":
    key = jax.random.PRNGKey(0)
    k_x, k_w, k_b = jax.random.split(key, 3)

    # Small shapes consistent with the module: input (B, S, D), dense (D_out=D, D_in=D).
    B, S, D = 8, 16, 256
    hidden_states = jax.random.normal(k_x, (B, S, D), jnp.float32)
    # params['meta_learner.pooler.dense.weight'] : (D_out, D_in), bias: (D_out,)
    dense_weight = 0.02 * jax.random.normal(k_w, (D, D), jnp.float32)
    dense_bias = 0.02 * jax.random.normal(k_b, (D,), jnp.float32)

    fwd = jax.jit(pooler_forward)
    pooled = fwd(hidden_states, dense_weight, dense_bias)
    jax.block_until_ready(pooled)

    # Pure-JAX reference of the PyTorch forward.
    ref = jnp.tanh(hidden_states[:, 0, :] @ dense_weight.T + dense_bias)

    assert pooled.shape == (B, D)
    assert jnp.isfinite(pooled).all()
    assert jnp.allclose(pooled, ref, atol=1e-5, rtol=1e-5)
    print("KERNEL_OK")
</pallas_src>

<mosaic_0001>
module attributes {stable_mosaic.version = 11 : i64} {
  func.func @pooler_kernel(%arg0: i32, %arg1: memref<8x256xf32, #tpu.memory_space<vmem>>, %arg2: memref<256x256xf32, #tpu.memory_space<vmem>>, %arg3: memref<1x256xf32, #tpu.memory_space<vmem>>, %arg4: memref<8x256xf32, #tpu.memory_space<vmem>>) attributes {dimension_semantics = [#tpu.dimension_semantics<parallel>], iteration_bounds = array<i64: 1>, scalar_prefetch = 0 : i64, scratch_operands = 0 : i64, tpu.core_type = #tpu.core_type<tc>, window_params = [{transform_indices = @transform_0, window_bounds = array<i64: 8, 256>}, {pipeline_mode = #tpu.pipeline_mode<synchronous>, transform_indices = @transform_1, window_bounds = array<i64: 256, 256>}, {pipeline_mode = #tpu.pipeline_mode<synchronous>, transform_indices = @transform_2, window_bounds = array<i64: 1, 256>}, {transform_indices = @transform_3, window_bounds = array<i64: 8, 256>}]} {
    %c0 = arith.constant 0 : index
    %c0_0 = arith.constant 0 : index
    %0 = vector.load %arg1[%c0, %c0_0] : memref<8x256xf32, #tpu.memory_space<vmem>>, vector<8x256xf32>
    %c0_1 = arith.constant 0 : index
    %c0_2 = arith.constant 0 : index
    %1 = vector.load %arg2[%c0_1, %c0_2] : memref<256x256xf32, #tpu.memory_space<vmem>>, vector<256x256xf32>
    %cst = arith.constant dense<0.000000e+00> : vector<8x256xf32>
    %2 = tpu.matmul %0, %1, %cst {dimension_numbers = #tpu.dot_dimension_numbers<[1], [1], [0], [0], [0, 0, 1, 0], [], []>} : vector<8x256xf32>, vector<256x256xf32>, vector<8x256xf32> -> vector<8x256xf32>
    %c0_3 = arith.constant 0 : index
    %c0_4 = arith.constant 0 : index
    %3 = vector.load %arg3[%c0_3, %c0_4] : memref<1x256xf32, #tpu.memory_space<vmem>>, vector<1x256xf32>
    %4 = vector.broadcast %3 : vector<1x256xf32> to vector<8x256xf32>
    %5 = arith.addf %2, %4 : vector<8x256xf32>
    %6 = math.tanh %5 : vector<8x256xf32>
    %c0_5 = arith.constant 0 : index
    %c0_6 = arith.constant 0 : index
    %7 = vector.load %arg4[%c0_5, %c0_6] : memref<8x256xf32, #tpu.memory_space<vmem>>, vector<8x256xf32>
    tpu.vector_store %arg4[%c0_5, %c0_6], %6 {strides = array<i32>} : memref<8x256xf32, #tpu.memory_space<vmem>>, vector<8x256xf32>,
    return
  }
  func.func @transform_0(%arg0: i32) -> (i32, i32) {
    %c0_i32 = arith.constant 0 : i32
    %c0_i32_0 = arith.constant 0 : i32
    return %arg0, %c0_i32 : i32, i32
  }
  func.func @transform_1(%arg0: i32) -> (i32, i32) {
    %c0_i32 = arith.constant 0 : i32
    %c0_i32_0 = arith.constant 0 : i32
    %c0_i32_1 = arith.constant 0 : i32
    return %c0_i32, %c0_i32_0 : i32, i32
  }
  func.func @transform_2(%arg0: i32) -> (i32, i32) {
    %c0_i32 = arith.constant 0 : i32
    %c0_i32_0 = arith.constant 0 : i32
    %c0_i32_1 = arith.constant 0 : i32
    return %c0_i32, %c0_i32_0 : i32, i32
  }
  func.func @transform_3(%arg0: i32) -> (i32, i32) {
    %c0_i32 = arith.constant 0 : i32
    %c0_i32_0 = arith.constant 0 : i32
    return %arg0, %c0_i32 : i32, i32
  }
}

</mosaic_0001>

<bundles_post_ra>
// kernel: pooler_forward.1
= control target key start
LH: loop header
LB: loop body
LE: loop exit
PB: predicated region body
PF: predicated region fallthrough
CT: control target
= control target key end

     0   :  { %8 = vsyncpa [#allocation3], 0  ;;  %s374_s0 = inlined_call_operand.vmem [shape: f32[8,256], index: 0, kind: input, shape index: {}]   ;;  %s375_s1 = inlined_call_operand.hbm [shape: f32[256,256], index: 1, kind: input, shape index: {}]   ;;  %s376_s2 = inlined_call_operand.vmem [shape: f32[1,256], index: 2, kind: input, shape index: {}]   ;;  %s377_s3 = inlined_call_operand.hbm [shape: f32[8,256], index: 3, kind: output, shape index: {}]  }
   0x1   :  { %9 = vsyncpa [#allocation4], 0  ;;  %s317_s12 = smov [#allocation2]   ;;  %s269_s16 = scalar_lea.hbm %s375_s1, 8192 }
   0x2   :  { %s17_s13 = sshll.u32 %s317_s12, 4  ;;  %p270_p0 = scmp.ne.s32.totalorder %s375_s1, %s269_s16  ;;  %s18_s13 = int_to_ptr.vmem [resolvable:$true] %s17_s13 }
   0x3   :  { %p273_p1 = scmp.lt.u32.totalorder %s269_s16, %s375_s1 }
   0x5   :  { %p275_p2 = pnand %p273_p1, %p270_p0 }
   0x7   :  { %278 = shalt.err (!%p275_p2)
}
   0x8   :  { %s279_s21 = scalar_lea.vmem %s18_s13, 8192  ;;  %p284_p4 = scmp.lt.s32.totalorder %s18_s13, %s18_s13 }
   0x9   :  { %p280_p3 = scmp.ne.s32.totalorder %s18_s13, %s279_s21  ;;  %p285_p5 = scmp.lt.s32.totalorder %s279_s21, %s279_s21 }
   0xb   :  { %p286_p6 = por %p285_p5, %p284_p4 }
   0xd   :  { %p287_p7 = pnand %p286_p6, %p280_p3 }
   0xf   :  { %290 = shalt.err (!%p287_p7)
}
  0x10   :  { %s318_s22 = smov 256   ;;  %s319_s23 = smov 16  }
  0x11   :  { %23 = dma.hbm_to_vmem [thread:$0]  %s375_s1, 8192, %s18_s13, [#allocation3], %s318_s22, %s318_s22, %s319_s23  }
  0x12   :  { %313 = dma.done.wait [#allocation3], 8192  }
  0x13   :  { %314 = vsyncadd [#allocation3], 4294959104  ;;  %v32_v0 = vld [vmem:[#allocation2 + $0x8] sm:$0xff]  ;;  %v34_v1 = vld [vmem:[#allocation2 + $0x18] sm:$0xff]  ;;  %s320_s4 = smov [#allocation5]  }
  0x14   :  { %v31_v2 = vld [vmem:[#allocation2] sm:$0xff]  ;;  %v197_v3 = vpack.c.bf16 %v34_v1, %v32_v0  ;;  %v33_v4 = vld [vmem:[#allocation2 + $0x10] sm:$0xff]  ;;  %v36_v5 = vld [vmem:[#allocation2 + $0x28] sm:$0xff]  ;;  %s188_s5 = sshll.u32 %s320_s4, 4  ;;  %s189_s5 = int_to_ptr.vmem [resolvable:$true] %s188_s5 }
  0x15   :  { %v38_v6 = vld [vmem:[#allocation2 + $0x38] sm:$0xff]  ;;  %v199_v7 = vpack.c.bf16 %v33_v4, %v31_v2  ;;  %v35_v9 = vld [vmem:[#allocation2 + $0x20] sm:$0xff]  ;;  %v37_v10 = vld [vmem:[#allocation2 + $0x30] sm:$0xff]  ;;  %p296_p9 = scmp.lt.s32.totalorder %s189_s5, %s189_s5 }
  0x16   :  { %v201_v8 = vpack.c.bf16 %v38_v6, %v36_v5  ;;  %198 = vmatprep.subr.bf16.mxu0 %v197_v3  ;;  %v40_v11 = vld [vmem:[#allocation2 + $0x48] sm:$0xff]  ;;  %v42_v12 = vld [vmem:[#allocation2 + $0x58] sm:$0xff]  ;;  %v203_v13 = vpack.c.bf16 %v37_v10, %v35_v9  ;;  %v39_v15 = vld [vmem:[#allocation2 + $0x40] sm:$0xff] }
  0x17   :  { %200 = vmatpush1.bf16.xpose.msra.mxu0 %v199_v7  ;;  %v205_v14 = vpack.c.bf16 %v42_v12, %v40_v11  ;;  %v41_v16 = vld [vmem:[#allocation2 + $0x50] sm:$0xff]  ;;  %v44_v17 = vld [vmem:[#allocation2 + $0x68] sm:$0xff]  ;;  %v46_v18 = vld [vmem:[#allocation2 + $0x78] sm:$0xff] }
  0x18   :  { %202 = vmatprep.subr.bf16.mxu0 %v201_v8  ;;  %v207_v19 = vpack.c.bf16 %v41_v16, %v39_v15  ;;  %v209_v20 = vpack.c.bf16 %v46_v18, %v44_v17  ;;  %v43_v21 = vld [vmem:[#allocation2 + $0x60] sm:$0xff]  ;;  %v45_v22 = vld [vmem:[#allocation2 + $0x70] sm:$0xff]  ;;  %v30_v23 = vld [vmem:[%s374_s0 + $0x8] sm:$0xff] }
  0x19   :  { %v48_v24 = vld [vmem:[#allocation2 + $0x88] sm:$0xff]  ;;  %v50_v25 = vld [vmem:[#allocation2 + $0x98] sm:$0xff]  ;;  %171 = vmatprep.mubr.f32.mxu0 %v30_v23  ;;  %v211_v26 = vpack.c.bf16 %v45_v22, %v43_v21  ;;  %v47_v28 = vld [vmem:[#allocation2 + $0x80] sm:$0xff] }
  0x1a   :  { %v213_v27 = vpack.c.bf16 %v50_v25, %v48_v24  ;;  %v49_v29 = vld [vmem:[#allocation2 + $0x90] sm:$0xff]  ;;  %v52_v30 = vld [vmem:[#allocation2 + $0xa8] sm:$0xff]  ;;  %v54_v31 = vld [vmem:[#allocation2 + $0xb8] sm:$0xff] }
  0x1b   :  { %v215_v32 = vpack.c.bf16 %v49_v29, %v47_v28  ;;  %v217_v33 = vpack.c.bf16 %v54_v31, %v52_v30  ;;  %v51_v34 = vld [vmem:[#allocation2 + $0xa0] sm:$0xff]  ;;  %v53_v35 = vld [vmem:[#allocation2 + $0xb0] sm:$0xff]  ;;  %v56_v36 = vld [vmem:[#allocation2 + $0xc8] sm:$0xff] }
  0x1c   :  { %v58_v37 = vld [vmem:[#allocation2 + $0xd8] sm:$0xff]  ;;  %v219_v38 = vpack.c.bf16 %v53_v35, %v51_v34  ;;  %v55_v40 = vld [vmem:[#allocation2 + $0xc0] sm:$0xff]  ;;  %v57_v41 = vld [vmem:[#allocation2 + $0xd0] sm:$0xff]  ;;  %v97_v34 = vlaneseq }
  0x1d   :  { %v221_v39 = vpack.c.bf16 %v58_v37, %v56_v36  ;;  %v60_v42 = vld [vmem:[#allocation2 + $0xe8] sm:$0xff]  ;;  %v62_v43 = vld [vmem:[#allocation2 + $0xf8] sm:$0xff]  ;;  %v223_v44 = vpack.c.bf16 %v57_v41, %v55_v40  ;;  %v59_v46 = vld [vmem:[#allocation2 + $0xe0] sm:$0xff] }
  0x1e   :  { %v225_v45 = vpack.c.bf16 %v62_v43, %v60_v42  ;;  %v61_v47 = vld [vmem:[#allocation2 + $0xf0] sm:$0xff]  ;;  %v64_v48 = vld [vmem:[#allocation2 + $0x108] sm:$0xff]  ;;  %v66_v49 = vld [vmem:[#allocation2 + $0x118] sm:$0xff]  ;;  %v98_v35 = vshrl.u32 %v97_v34, 7 }
  0x1f   :  { %204 = vmatpush1.bf16.xpose.msra.mxu0 %v203_v13  ;;  %v227_v50 = vpack.c.bf16 %v61_v47, %v59_v46  ;;  %v229_v51 = vpack.c.bf16 %v66_v49, %v64_v48  ;;  %v63_v52 = vld [vmem:[#allocation2 + $0x100] sm:$0xff]  ;;  %v65_v53 = vld [vmem:[#allocation2 + $0x110] sm:$0xff]  ;;  %v68_v54 = vld [vmem:[#allocation2 + $0x128] sm:$0xff] }
  0x20   :  { %206 = vmatprep.subr.bf16.mxu0 %v205_v14  ;;  %v70_v55 = vld [vmem:[#allocation2 + $0x138] sm:$0xff]  ;;  %v231_v56 = vpack.c.bf16 %v65_v53, %v63_v52  ;;  %v67_v58 = vld [vmem:[#allocation2 + $0x120] sm:$0xff]  ;;  %v69_v59 = vld [vmem:[#allocation2 + $0x130] sm:$0xff]  ;;  %v99_v36 = vsub.s32 0, %v98_v35 }
  0x21   :  { %v233_v57 = vpack.c.bf16 %v70_v55, %v68_v54  ;;  %v72_v60 = vld [vmem:[#allocation2 + $0x148] sm:$0xff]  ;;  %v74_v61 = vld [vmem:[#allocation2 + $0x158] sm:$0xff]  ;;  %v235_v62 = vpack.c.bf16 %v69_v59, %v67_v58  ;;  %v71_v0 = vld [vmem:[#allocation2 + $0x140] sm:$0xff] }
  0x22   :  { %v237_v63 = vpack.c.bf16 %v74_v61, %v72_v60  ;;  %v73_v1 = vld [vmem:[#allocation2 + $0x150] sm:$0xff]  ;;  %v76_v2 = vld [vmem:[#allocation2 + $0x168] sm:$0xff]  ;;  %v78_v3 = vld [vmem:[#allocation2 + $0x178] sm:$0xff] }
  0x23   :  { %v239_v4 = vpack.c.bf16 %v73_v1, %v71_v0  ;;  %v241_v5 = vpack.c.bf16 %v78_v3, %v76_v2  ;;  %v75_v6 = vld [vmem:[#allocation2 + $0x160] sm:$0xff]  ;;  %v77_v7 = vld [vmem:[#allocation2 + $0x170] sm:$0xff]  ;;  %v80_v8 = vld [vmem:[#allocation2 + $0x188] sm:$0xff] }
  0x24   :  { %v82_v9 = vld [vmem:[#allocation2 + $0x198] sm:$0xff]  ;;  %v243_v10 = vpack.c.bf16 %v77_v7, %v75_v6  ;;  %v79_v12 = vld [vmem:[#allocation2 + $0x180] sm:$0xff]  ;;  %v81_v13 = vld [vmem:[#allocation2 + $0x190] sm:$0xff] }
  0x25   :  { %v245_v11 = vpack.c.bf16 %v82_v9, %v80_v8  ;;  %v84_v14 = vld [vmem:[#allocation2 + $0x1a8] sm:$0xff]  ;;  %v86_v15 = vld [vmem:[#allocation2 + $0x1b8] sm:$0xff]  ;;  %v247_v16 = vpack.c.bf16 %v81_v13, %v79_v12  ;;  %v83_v18 = vld [vmem:[#allocation2 + $0x1a0] sm:$0xff] }
  0x26   :  { %v249_v17 = vpack.c.bf16 %v86_v15, %v84_v14  ;;  %v90_v21 = vld [vmem:[#allocation2 + $0x1d8] sm:$0xff]  ;;  %v87_v24 = vld [vmem:[#allocation2 + $0x1c0] sm:$0xff]  ;;  %v89_v25 = vld [vmem:[#allocation2 + $0x1d0] sm:$0xff] }
  0x27   :  { %208 = vmatpush1.bf16.xpose.msra.mxu0 %v207_v19  ;;  %v85_v19 = vld [vmem:[#allocation2 + $0x1b0] sm:$0xff]  ;;  %v255_v28 = vpack.c.bf16 %v89_v25, %v87_v24  ;;  %v91_v30 = vld [vmem:[#allocation2 + $0x1e0] sm:$0xff] }
  0x28   :  { %210 = vmatprep.subr.bf16.mxu0 %v209_v20  ;;  %v88_v20 = vld [vmem:[#allocation2 + $0x1c8] sm:$0xff]  ;;  %v251_v22 = vpack.c.bf16 %v85_v19, %v83_v18  ;;  %v93_v31 = vld [vmem:[#allocation2 + $0x1f0] sm:$0xff]  ;;  %v95_v37 = vld [vmem:[%s376_s2] sm:$0x3] }
  0x29   :  { %v253_v23 = vpack.c.bf16 %v90_v21, %v88_v20 }
  0x2f   :  { %212 = vmatpush1.bf16.xpose.msra.mxu0 %v211_v26  ;;  %v92_v26 = vld [vmem:[#allocation2 + $0x1e8] sm:$0xff] }
  0x30   :  { %214 = vmatprep.subr.bf16.mxu0 %v213_v27  ;;  %v94_v27 = vld [vmem:[#allocation2 + $0x1f8] sm:$0xff] }
  0x31   :  { %v257_v29 = vpack.c.bf16 %v94_v27, %v92_v26 }
  0x37   :  { %216 = vmatpush1.bf16.xpose.msra.mxu0 %v215_v32  ;;  %v259_v32 = vpack.c.bf16 %v93_v31, %v91_v30 }
  0x38   :  { %218 = vmatprep.subr.bf16.mxu0 %v217_v33  ;;  %v29_v33 = vld [vmem:[%s374_s0] sm:$0xff]  ;;  %s291_s0 = scalar_lea.vmem %s189_s5, 256 }
  0x39   :  { %p292_p8 = scmp.ne.s32.totalorder %s189_s5, %s291_s0  ;;  %p297_p10 = scmp.lt.s32.totalorder %s291_s0, %s291_s0 }
  0x3b   :  { %p298_p11 = por %p297_p10, %p296_p9 }
  0x3d   :  { %p299_p12 = pnand %p298_p11, %p292_p8 }
  0x3f   :  { %220 = vmatpush1.bf16.xpose.msra.mxu0 %v219_v38  ;;  %v103_v38 = vsub.s32 1, %v98_v35 }
  0x40   :  { %222 = vmatprep.subr.bf16.mxu0 %v221_v39  ;;  %v100_v39 = vrot.slane %v95_v37, %v99_v36 }
  0x41   :  { %v104_v40 = vrot.slane %v95_v37, %v103_v38 }
  0x47   :  { %224 = vmatpush1.bf16.xpose.msra.mxu0 %v223_v44 }
  0x48   :  { %226 = vmatprep.subr.bf16.mxu0 %v225_v45 }
  0x4f   :  { %228 = vmatpush1.bf16.xpose.msra.mxu0 %v227_v50 }
  0x50   :  { %230 = vmatprep.subr.bf16.mxu0 %v229_v51 }
  0x57   :  { %232 = vmatpush1.bf16.xpose.msra.mxu0 %v231_v56 }
  0x58   :  { %234 = vmatprep.subr.bf16.mxu0 %v233_v57 }
  0x5f   :  { %236 = vmatpush1.bf16.xpose.msra.mxu0 %v235_v62 }
  0x60   :  { %238 = vmatprep.subr.bf16.mxu0 %v237_v63 }
  0x67   :  { %240 = vmatpush1.bf16.xpose.msra.mxu0 %v239_v4 }
  0x68   :  { %242 = vmatprep.subr.bf16.mxu0 %v241_v5 }
  0x6f   :  { %244 = vmatpush1.bf16.xpose.msra.mxu0 %v243_v10 }
  0x70   :  { %246 = vmatprep.subr.bf16.mxu0 %v245_v11 }
  0x77   :  { %248 = vmatpush1.bf16.xpose.msra.mxu0 %v247_v16 }
  0x78   :  { %250 = vmatprep.subr.bf16.mxu0 %v249_v17 }
  0x7f   :  { %252 = vmatpush1.bf16.xpose.msra.mxu0 %v251_v22 }
  0x80   :  { %254 = vmatprep.subr.bf16.mxu0 %v253_v23 }
  0x87   :  { %256 = vmatpush1.bf16.xpose.msra.mxu0 %v255_v28 }
  0x88   :  { %258 = vmatprep.subr.bf16.mxu0 %v257_v29 }
  0x8f   :  { %260 = vmatpush1.bf16.xpose.msra.mxu0 %v259_v32 }
  0x96   :  { %172 = vmatmul.mubr.f32.vlgmr.msra.gmra.mrb[0].mxu0 %v29_v33 }
 0x169   :  { %v173_v41 = vpop.f32.mrb[0].mxu0 }
 0x16a   :  { %v174_v42 = vadd.f32 %v173_v41, %v100_v39  ;;  %v175_v43 = vpop.f32.mrb[1].mxu0 }
 0x16b   :  { %v176_v44 = vadd.f32 %v175_v43, %v104_v40 }
 0x16c   :  { %265 = vtanh.f32 %v174_v42 }
 0x16d   :  { %267 = vtanh.f32 %v176_v44 }
 0x176   :  { %v266_v45 = vpop.eup %265 }
 0x177   :  { %v268_v46 = vpop.eup %267  ;;  %180 = vst [vmem:[#allocation5] sm:$0xff] %v266_v45 }
 0x178   :  { %181 = vst [vmem:[#allocation5 + $0x8] sm:$0xff] %v268_v46 }
 0x179   :  { %302 = shalt.err (!%p299_p12)
}
 0x17a   :  { %s303_s7 = scalar_lea.hbm %s377_s3, 256 }
 0x17b   :  { %p304_p13 = scmp.ne.s32.totalorder %s377_s3, %s303_s7  ;;  %p307_p0 = scmp.lt.u32.totalorder %s303_s7, %s377_s3 }
 0x17d   :  { %p309_p1 = pnand %p307_p0, %p304_p13 }
 0x17f   :  { %312 = shalt.err (!%p309_p1)
}
 0x180   :  { %191 = dma.vmem_to_hbm [thread:$0]  %s189_s5, 256, %s377_s3, [#allocation4]  }
 0x181   :  { %315 = dma.done.wait [#allocation4], 256  }
 0x182   :  { %316 = vsyncadd [#allocation4], 4294967040 }
 0x183   :  { %195 = vsyncpa [#allocation3], 1 }
 0x184   :  { %196 = vsyncpa [#allocation4], 1 }

</bundles_post_ra>
